<compile_context>
chip_gen: v7x
topology: tpu7x:2x2x1
jax: 0.10.0
libtpu: 0.0.40
codegen_flags: <defaults>
</compile_context>

<pallas_src>
import functools

import jax
import jax.numpy as jnp
from jax.experimental import pallas as pl
from jax.experimental.pallas import tpu as pltpu

TWO_48_MINUS_1 = float(2 ** 48 - 1)
PAD = 128  # padded feature width (== hidden_dim == regressor_hidden_dim)


# ----------------------------------------------------------------------------
# Fused encoder kernel: id_mlp + edge_mlp + 2x GINEConv + global mean pool
# ----------------------------------------------------------------------------
def _encoder_kernel(names_ref, eattr_ref, src_ref, dst_ref, batch_ref,
                    mats_ref, vecs_ref, out_ref, *, num_graphs):
    f32, bf16 = jnp.float32, jnp.bfloat16
    n_nodes = names_ref.shape[0]
    n_edges = eattr_ref.shape[0]

    def vec(i):  # [1, PAD] f32 bias / weight-row
        return vecs_ref[i:i + 1, :]

    # ---- id_mlp: Linear(1,P) done as a VPU broadcast (avoid K=1 MXU matmul), ReLU, Linear(P,P)
    raw = jnp.clip(names_ref[...] / TWO_48_MINUS_1, 0.0, 1.0)                  # [N,1]
    x = jnp.maximum(raw * vec(0) + vec(1), 0.0)                                # [N,P]
    x = jnp.dot(x.astype(bf16), mats_ref[0], preferred_element_type=f32) + vec(2)

    # ---- edge_mlp (shared by both convs)
    e = jnp.maximum(eattr_ref[...] * vec(3) + vec(4), 0.0)                     # [E,P]
    e = jnp.dot(e.astype(bf16), mats_ref[1], preferred_element_type=f32) + vec(5)
    e_bf = e.astype(bf16)

    # ---- gather / scatter operators built in VMEM from int32 index vectors (nothing O(N*E) in HBM)
    gather_oh = jnp.where(
        jax.lax.broadcasted_iota(jnp.int32, (n_edges, n_nodes), 1) == src_ref[...],
        1.0, 0.0).astype(bf16)                                                 # [E,N]
    scatter_oh = jnp.where(
        jax.lax.broadcasted_iota(jnp.int32, (n_nodes, n_edges), 0) == dst_ref[...],
        1.0, 0.0).astype(bf16)                                                 # [N,E]

    def gine_conv(h, lin_w, lin_b, w1, b1, w2, b2):
        # GINEConv (eps=0) with the model's outer F.relu fused into the last Linear of nn.
        e_proj = jnp.dot(e_bf, lin_w, preferred_element_type=f32) + lin_b       # [E,P]
        gathered = jnp.dot(gather_oh, h.astype(bf16), preferred_element_type=f32)
        msg = jnp.maximum(gathered + e_proj, 0.0)                               # [E,P]
        agg = jnp.dot(scatter_oh, msg.astype(bf16), preferred_element_type=f32) + h
        z = jnp.maximum(jnp.dot(agg.astype(bf16), w1, preferred_element_type=f32) + b1, 0.0)
        return jnp.maximum(jnp.dot(z.astype(bf16), w2, preferred_element_type=f32) + b2, 0.0)

    h = gine_conv(x, mats_ref[2], vec(6), mats_ref[3], vec(7), mats_ref[4], vec(8))
    h = gine_conv(h, mats_ref[5], vec(9), mats_ref[6], vec(10), mats_ref[7], vec(11))

    # ---- global mean pool per graph (exact, f32)
    pool_oh = jnp.where(
        jax.lax.broadcasted_iota(jnp.int32, (num_graphs, n_nodes), 0) == batch_ref[...],
        1.0, 0.0)                                                              # [B,N]
    counts = jnp.maximum(jnp.sum(pool_oh, axis=1, keepdims=True), 1.0)         # [B,1]
    out_ref[...] = jnp.dot(pool_oh, h, preferred_element_type=f32) / counts


def encode_graph(graph, mats, vecs, num_graphs):
    kernel = functools.partial(_encoder_kernel, num_graphs=num_graphs)
    hidden = mats.shape[-1]
    return pl.pallas_call(
        kernel,
        out_shape=jax.ShapeDtypeStruct((num_graphs, hidden), jnp.float32),
        in_specs=[pl.BlockSpec(memory_space=pltpu.MemorySpace.VMEM)] * 7,
        out_specs=pl.BlockSpec(memory_space=pltpu.MemorySpace.VMEM),
    )(graph["node_names"], graph["edge_attr"], graph["src"], graph["dst"],
      graph["batch"], mats, vecs)


# ----------------------------------------------------------------------------
# Fused regressor kernel: split first Linear + 3 residual blocks + head + sigmoid/clip
# ----------------------------------------------------------------------------
def _regressor_kernel(s_ref, g_ref, d_ref, mats_ref, vecs_ref, out_ref, *,
                      n_blocks, min_value):
    f32, bf16 = jnp.float32, jnp.bfloat16

    def vec(i):
        return vecs_ref[i:i + 1, :]

    # first regressor Linear with the [s | g | depth] concat folded into weight slabs
    h = (jnp.dot(s_ref[...].astype(bf16), mats_ref[0], preferred_element_type=f32)
         + jnp.dot(g_ref[...].astype(bf16), mats_ref[1], preferred_element_type=f32)
         + d_ref[...] * vec(0) + vec(1))
    h = jnp.maximum(h, 0.0)

    # residual blocks (BatchNorm folded into the linears, eval mode; Dropout = identity)
    for i in range(n_blocks):
        y = jnp.dot(h.astype(bf16), mats_ref[2 + 2 * i], preferred_element_type=f32) + vec(2 + 2 * i)
        y = jnp.maximum(y, 0.0)
        y = jnp.dot(y.astype(bf16), mats_ref[3 + 2 * i], preferred_element_type=f32) + vec(3 + 2 * i)
        h = jnp.maximum(y + h, 0.0)

    # final Linear(128 -> 1) as VPU multiply + lane reduction (avoid a 1-lane MXU matmul)
    wl = vec(2 + 2 * n_blocks)
    bl = vecs_ref[3 + 2 * n_blocks:4 + 2 * n_blocks, 0:1]
    logit = jnp.sum(h * wl, axis=1, keepdims=True) + bl
    p = jax.nn.sigmoid(logit)
    out_ref[...] = jnp.clip(p, min_value, 1.0 - min_value)


# ----------------------------------------------------------------------------
# Deterministic parameter initialization (zero-padded to 128-lane widths, packed)
# ----------------------------------------------------------------------------
def _padded_dense(key, in_dim, out_dim, in_pad, out_pad, scale=0.1):
    kw, kb = jax.random.split(key)
    w = jnp.zeros((in_pad, out_pad), jnp.float32)
    w = w.at[:in_dim, :out_dim].set(scale * jax.random.normal(kw, (in_dim, out_dim), jnp.float32))
    b = jnp.zeros((1, out_pad), jnp.float32)
    b = b.at[:, :out_dim].set(scale * jax.random.normal(kb, (1, out_dim), jnp.float32))
    return w, b


def _bn_init(key, dim):
    k1, k2, k3, k4 = jax.random.split(key, 4)
    gamma = 1.0 + 0.1 * jax.random.normal(k1, (dim,), jnp.float32)
    beta = 0.1 * jax.random.normal(k2, (dim,), jnp.float32)
    mean = 0.1 * jax.random.normal(k3, (dim,), jnp.float32)
    var = 1.0 + 0.1 * jnp.abs(jax.random.normal(k4, (dim,), jnp.float32))
    return gamma, beta, mean, var


def _bn_fold(w, b, gamma, beta, mean, var, eps=1e-5):
    scale = gamma / jnp.sqrt(var + eps)
    return w * scale[None, :], (b - mean[None, :]) * scale[None, :] + beta[None, :]


def _pack_encoder(idp, edp, c1, c2):
    mats = jnp.stack([idp["w2"], edp["w2"],
                      c1["lin_w"], c1["w1"], c1["w2"],
                      c2["lin_w"], c2["w1"], c2["w2"]], axis=0).astype(jnp.bfloat16)
    vecs = jnp.concatenate([idp["w1"], idp["b1"], idp["b2"],
                            edp["w1"], edp["b1"], edp["b2"],
                            c1["lin_b"], c1["b1"], c1["b2"],
                            c2["lin_b"], c2["b1"], c2["b2"]], axis=0)
    return mats, vecs


def init_params(key, hidden_dim=128, node_emb_dim=64, edge_emb_dim=32,
                regressor_hidden_dim=128, regressor_blocks=3):
    # TODO(synk): only the default use_goal=True / use_depth=True configuration is implemented.
    assert hidden_dim == PAD and regressor_hidden_dim == PAD
    kit = iter(jax.random.split(key, 64))

    def mlp2(emb_dim):  # Linear(1, emb) / ReLU / Linear(emb, emb), zero-padded to PAD
        w1, b1 = _padded_dense(next(kit), 1, emb_dim, 1, PAD)
        w2, b2 = _padded_dense(next(kit), emb_dim, emb_dim, PAD, PAD)
        return {"w1": w1, "b1": b1, "w2": w2, "b2": b2}

    idp = mlp2(node_emb_dim)
    edp = mlp2(edge_emb_dim)

    def gine(in_dim):
        lin_w, lin_b = _padded_dense(next(kit), edge_emb_dim, in_dim, PAD, PAD)
        w1, b1 = _padded_dense(next(kit), in_dim, hidden_dim, PAD, PAD)
        w2, b2 = _padded_dense(next(kit), hidden_dim, hidden_dim, PAD, PAD)
        return {"lin_w": lin_w, "lin_b": lin_b, "w1": w1, "b1": b1, "w2": w2, "b2": b2}

    state_c1, state_c2 = gine(node_emb_dim), gine(hidden_dim)
    goal_c1, goal_c2 = gine(node_emb_dim), gine(hidden_dim)

    state_mats, state_vecs = _pack_encoder(idp, edp, state_c1, state_c2)
    goal_mats, goal_vecs = _pack_encoder(idp, edp, goal_c1, goal_c2)

    # regressor: Linear(2*H+1, H) split into [s-slab | g-slab | depth-row], one bias
    w0_s, b0 = _padded_dense(next(kit), hidden_dim, regressor_hidden_dim, PAD, PAD)
    w0_g, _ = _padded_dense(next(kit), hidden_dim, regressor_hidden_dim, PAD, PAD)
    w0_d, _ = _padded_dense(next(kit), 1, regressor_hidden_dim, 1, PAD)

    block_mats, block_vecs = [], []
    for _ in range(regressor_blocks):
        w1, b1 = _padded_dense(next(kit), PAD, PAD, PAD, PAD)
        bn1 = _bn_init(next(kit), PAD)
        w2, b2 = _padded_dense(next(kit), PAD, PAD, PAD, PAD)
        bn2 = _bn_init(next(kit), PAD)
        w1f, b1f = _bn_fold(w1, b1, *bn1)
        w2f, b2f = _bn_fold(w2, b2, *bn2)
        block_mats += [w1f, w2f]
        block_vecs += [b1f, b2f]

    wl, bl = _padded_dense(next(kit), regressor_hidden_dim, 1, PAD, 1)
    bl_row = jnp.zeros((1, PAD), jnp.float32).at[0, 0].set(bl[0, 0])

    reg_mats = jnp.stack([w0_s, w0_g] + block_mats, axis=0).astype(jnp.bfloat16)
    reg_vecs = jnp.concatenate([w0_d, b0] + block_vecs + [wl.T, bl_row], axis=0)

    return {
        "state_mats": state_mats, "state_vecs": state_vecs,
        "goal_mats": goal_mats, "goal_vecs": goal_vecs,
        "reg_mats": reg_mats, "reg_vecs": reg_vecs,
        "n_blocks": regressor_blocks,
    }


# ----------------------------------------------------------------------------
# Graph preprocessing glue (only index vectors; no dense O(N*E) operators)
# ----------------------------------------------------------------------------
def prepare_graph(node_names, edge_index, edge_attr, batch):
    return {
        "node_names": jnp.asarray(node_names, jnp.float32).reshape(-1, 1),   # [N,1]
        "edge_attr": jnp.asarray(edge_attr, jnp.float32).reshape(-1, 1),     # [E,1]
        "src": jnp.asarray(edge_index[0], jnp.int32).reshape(-1, 1),         # [E,1]
        "dst": jnp.asarray(edge_index[1], jnp.int32).reshape(1, -1),         # [1,E]
        "batch": jnp.asarray(batch, jnp.int32).reshape(1, -1),               # [1,N]
    }


# ----------------------------------------------------------------------------
# Forward pass (3 fused pallas_calls total)
# ----------------------------------------------------------------------------
def distance_estimator_forward(params, state_graph, goal_graph, depth, min_value=0.001):
    num_graphs = int(depth.shape[0])
    s = encode_graph(state_graph, params["state_mats"], params["state_vecs"], num_graphs)
    g = encode_graph(goal_graph, params["goal_mats"], params["goal_vecs"], num_graphs)
    d = jnp.asarray(depth, jnp.float32).reshape(-1, 1)

    kernel = functools.partial(_regressor_kernel,
                               n_blocks=params["n_blocks"], min_value=min_value)
    out = pl.pallas_call(
        kernel,
        out_shape=jax.ShapeDtypeStruct((num_graphs, 1), jnp.float32),
        in_specs=[pl.BlockSpec(memory_space=pltpu.MemorySpace.VMEM)] * 5,
        out_specs=pl.BlockSpec(memory_space=pltpu.MemorySpace.VMEM),
    )(s, g, d, params["reg_mats"], params["reg_vecs"])
    return out[:, 0]


# ----------------------------------------------------------------------------
# Example
# ----------------------------------------------------------------------------
if __name__ == "__main__":
    key = jax.random.PRNGKey(0)
    pkey, dkey = jax.random.split(key)
    params = init_params(pkey)

    k1, k2, k3, k4, k5 = jax.random.split(dkey, 5)
    num_graphs = 2

    # state graph: 8 nodes (4 per graph), 12 directed edges
    state_names = jax.random.uniform(k1, (8,), jnp.float32, 0.0, 2.0 ** 30)
    state_edge_index = jnp.array([[0, 1, 2, 3, 0, 2, 4, 5, 6, 7, 4, 6],
                                  [1, 2, 3, 0, 2, 0, 5, 6, 7, 4, 6, 4]], jnp.int32)
    state_edge_attr = jax.random.uniform(k2, (12, 1), jnp.float32)
    state_batch = jnp.array([0, 0, 0, 0, 1, 1, 1, 1], jnp.int32)

    # goal graph: 6 nodes (3 per graph), 7 directed edges
    goal_names = jax.random.uniform(k3, (6,), jnp.float32, 0.0, 2.0 ** 30)
    goal_edge_index = jnp.array([[0, 1, 2, 3, 4, 5, 3],
                                 [1, 2, 0, 4, 5, 3, 5]], jnp.int32)
    goal_edge_attr = jax.random.uniform(k4, (7, 1), jnp.float32)
    goal_batch = jnp.array([0, 0, 0, 1, 1, 1], jnp.int32)

    depth = jax.random.uniform(k5, (num_graphs,), jnp.float32, 0.0, 10.0)

    state_graph = prepare_graph(state_names, state_edge_index, state_edge_attr, state_batch)
    goal_graph = prepare_graph(goal_names, goal_edge_index, goal_edge_attr, goal_batch)

    out = distance_estimator_forward(params, state_graph, goal_graph, depth)
    out = jax.block_until_ready(out)

    assert out.shape == (num_graphs,)
    assert bool(jnp.all(jnp.isfinite(out)))
    assert bool(jnp.all((out >= 0.001) & (out <= 0.999)))
    print("KERNEL_OK")
</pallas_src>

<mosaic_0001>
module attributes {stable_mosaic.version = 11 : i64} {
  func.func @_encoder_kernel(%arg0: memref<8x1xf32, #tpu.memory_space<vmem>>, %arg1: memref<12x1xf32, #tpu.memory_space<vmem>>, %arg2: memref<12x1xi32, #tpu.memory_space<vmem>>, %arg3: memref<1x12xi32, #tpu.memory_space<vmem>>, %arg4: memref<1x8xi32, #tpu.memory_space<vmem>>, %arg5: memref<8x128x128xbf16, #tpu.memory_space<vmem>>, %arg6: memref<12x128xf32, #tpu.memory_space<vmem>>, %arg7: memref<2x128xf32, #tpu.memory_space<vmem>>) attributes {dimension_semantics = [], scalar_prefetch = 0 : i64, scratch_operands = 0 : i64, tpu.core_type = #tpu.core_type<tc>} {
    %c0 = arith.constant 0 : index
    %c0_0 = arith.constant 0 : index
    %0 = vector.load %arg0[%c0, %c0_0] : memref<8x1xf32, #tpu.memory_space<vmem>>, vector<8x1xf32>
    %cst = arith.constant 2.81474977E+14 : f32
    %1 = vector.broadcast %cst : f32 to vector<8x1xf32>
    %2 = arith.divf %0, %1 : vector<8x1xf32>
    %cst_1 = arith.constant 0.000000e+00 : f32
    %cst_2 = arith.constant 1.000000e+00 : f32
    %3 = vector.broadcast %cst_1 : f32 to vector<8x1xf32>
    %4 = arith.maximumf %3, %2 : vector<8x1xf32>
    %5 = vector.broadcast %cst_2 : f32 to vector<8x1xf32>
    %6 = arith.minimumf %5, %4 : vector<8x1xf32>
    %c0_3 = arith.constant 0 : index
    %c0_4 = arith.constant 0 : index
    %7 = vector.load %arg6[%c0_3, %c0_4] : memref<12x128xf32, #tpu.memory_space<vmem>>, vector<1x128xf32>
    %8 = vector.broadcast %6 : vector<8x1xf32> to vector<8x128xf32>
    %9 = vector.broadcast %7 : vector<1x128xf32> to vector<8x128xf32>
    %10 = arith.mulf %8, %9 : vector<8x128xf32>
    %c1 = arith.constant 1 : index
    %c0_5 = arith.constant 0 : index
    %11 = vector.load %arg6[%c1, %c0_5] : memref<12x128xf32, #tpu.memory_space<vmem>>, vector<1x128xf32>
    %12 = vector.broadcast %11 : vector<1x128xf32> to vector<8x128xf32>
    %13 = arith.addf %10, %12 : vector<8x128xf32>
    %cst_6 = arith.constant 0.000000e+00 : f32
    %14 = vector.broadcast %cst_6 : f32 to vector<8x128xf32>
    %15 = arith.maximumf %13, %14 : vector<8x128xf32>
    %16 = arith.truncf %15 : vector<8x128xf32> to vector<8x128xbf16>
    %c0_7 = arith.constant 0 : index
    %c0_8 = arith.constant 0 : index
    %c0_9 = arith.constant 0 : index
    %17 = vector.load %arg5[%c0_7, %c0_8, %c0_9] : memref<8x128x128xbf16, #tpu.memory_space<vmem>>, vector<1x128x128xbf16>
    %18 = vector.shape_cast %17 : vector<1x128x128xbf16> to vector<128x128xbf16>
    %cst_10 = arith.constant dense<0.000000e+00> : vector<8x128xf32>
    %19 = tpu.matmul %16, %18, %cst_10 {dimension_numbers = #tpu.dot_dimension_numbers<[1], [0], [0], [1], [0, 0, 1, 1], [], []>} : vector<8x128xbf16>, vector<128x128xbf16>, vector<8x128xf32> -> vector<8x128xf32>
    %c2 = arith.constant 2 : index
    %c0_11 = arith.constant 0 : index
    %20 = vector.load %arg6[%c2, %c0_11] : memref<12x128xf32, #tpu.memory_space<vmem>>, vector<1x128xf32>
    %21 = vector.broadcast %20 : vector<1x128xf32> to vector<8x128xf32>
    %22 = arith.addf %19, %21 : vector<8x128xf32>
    %c0_12 = arith.constant 0 : index
    %c0_13 = arith.constant 0 : index
    %23 = vector.load %arg1[%c0_12, %c0_13] : memref<12x1xf32, #tpu.memory_space<vmem>>, vector<12x1xf32>
    %c3 = arith.constant 3 : index
    %c0_14 = arith.constant 0 : index
    %24 = vector.load %arg6[%c3, %c0_14] : memref<12x128xf32, #tpu.memory_space<vmem>>, vector<1x128xf32>
    %25 = vector.broadcast %23 : vector<12x1xf32> to vector<12x128xf32>
    %26 = vector.broadcast %24 : vector<1x128xf32> to vector<12x128xf32>
    %27 = arith.mulf %25, %26 : vector<12x128xf32>
    %c4 = arith.constant 4 : index
    %c0_15 = arith.constant 0 : index
    %28 = vector.load %arg6[%c4, %c0_15] : memref<12x128xf32, #tpu.memory_space<vmem>>, vector<1x128xf32>
    %29 = vector.broadcast %28 : vector<1x128xf32> to vector<12x128xf32>
    %30 = arith.addf %27, %29 : vector<12x128xf32>
    %cst_16 = arith.constant 0.000000e+00 : f32
    %31 = vector.broadcast %cst_16 : f32 to vector<12x128xf32>
    %32 = arith.maximumf %30, %31 : vector<12x128xf32>
    %33 = arith.truncf %32 : vector<12x128xf32> to vector<12x128xbf16>
    %c1_17 = arith.constant 1 : index
    %c0_18 = arith.constant 0 : index
    %c0_19 = arith.constant 0 : index
    %34 = vector.load %arg5[%c1_17, %c0_18, %c0_19] : memref<8x128x128xbf16, #tpu.memory_space<vmem>>, vector<1x128x128xbf16>
    %35 = vector.shape_cast %34 : vector<1x128x128xbf16> to vector<128x128xbf16>
    %cst_20 = arith.constant dense<0.000000e+00> : vector<12x128xf32>
    %36 = tpu.matmul %33, %35, %cst_20 {dimension_numbers = #tpu.dot_dimension_numbers<[1], [0], [0], [1], [0, 0, 1, 1], [], []>} : vector<12x128xbf16>, vector<128x128xbf16>, vector<12x128xf32> -> vector<12x128xf32>
    %c5 = arith.constant 5 : index
    %c0_21 = arith.constant 0 : index
    %37 = vector.load %arg6[%c5, %c0_21] : memref<12x128xf32, #tpu.memory_space<vmem>>, vector<1x128xf32>
    %38 = vector.broadcast %37 : vector<1x128xf32> to vector<12x128xf32>
    %39 = arith.addf %36, %38 : vector<12x128xf32>
    %40 = arith.truncf %39 : vector<12x128xf32> to vector<12x128xbf16>
    %41 = tpu.iota {dimensions = array<i32: 1>} : vector<12x8xi32>
    %c0_22 = arith.constant 0 : index
    %c0_23 = arith.constant 0 : index
    %42 = vector.load %arg2[%c0_22, %c0_23] : memref<12x1xi32, #tpu.memory_space<vmem>>, vector<12x1xi32>
    %43 = vector.broadcast %42 : vector<12x1xi32> to vector<12x8xi32>
    %44 = arith.cmpi eq, %41, %43 : vector<12x8xi32>
    %cst_24 = arith.constant 1.000000e+00 : f32
    %cst_25 = arith.constant 0.000000e+00 : f32
    %45 = vector.broadcast %cst_24 : f32 to vector<12x8xf32>
    %46 = vector.broadcast %cst_25 : f32 to vector<12x8xf32>
    %47 = arith.select %44, %45, %46 : vector<12x8xi1>, vector<12x8xf32>
    %48 = arith.truncf %47 : vector<12x8xf32> to vector<12x8xbf16>
    %49 = tpu.iota {dimensions = array<i32: 0>} : vector<8x12xi32>
    %c0_26 = arith.constant 0 : index
    %c0_27 = arith.constant 0 : index
    %50 = vector.load %arg3[%c0_26, %c0_27] : memref<1x12xi32, #tpu.memory_space<vmem>>, vector<1x12xi32>
    %51 = vector.broadcast %50 : vector<1x12xi32> to vector<8x12xi32>
    %52 = arith.cmpi eq, %49, %51 : vector<8x12xi32>
    %cst_28 = arith.constant 1.000000e+00 : f32
    %cst_29 = arith.constant 0.000000e+00 : f32
    %53 = vector.broadcast %cst_28 : f32 to vector<8x12xf32>
    %54 = vector.broadcast %cst_29 : f32 to vector<8x12xf32>
    %55 = arith.select %52, %53, %54 : vector<8x12xi1>, vector<8x12xf32>
    %56 = arith.truncf %55 : vector<8x12xf32> to vector<8x12xbf16>
    %c2_30 = arith.constant 2 : index
    %c0_31 = arith.constant 0 : index
    %c0_32 = arith.constant 0 : index
    %57 = vector.load %arg5[%c2_30, %c0_31, %c0_32] : memref<8x128x128xbf16, #tpu.memory_space<vmem>>, vector<1x128x128xbf16>
    %58 = vector.shape_cast %57 : vector<1x128x128xbf16> to vector<128x128xbf16>
    %c6 = arith.constant 6 : index
    %c0_33 = arith.constant 0 : index
    %59 = vector.load %arg6[%c6, %c0_33] : memref<12x128xf32, #tpu.memory_space<vmem>>, vector<1x128xf32>
    %c3_34 = arith.constant 3 : index
    %c0_35 = arith.constant 0 : index
    %c0_36 = arith.constant 0 : index
    %60 = vector.load %arg5[%c3_34, %c0_35, %c0_36] : memref<8x128x128xbf16, #tpu.memory_space<vmem>>, vector<1x128x128xbf16>
    %61 = vector.shape_cast %60 : vector<1x128x128xbf16> to vector<128x128xbf16>
    %c7 = arith.constant 7 : index
    %c0_37 = arith.constant 0 : index
    %62 = vector.load %arg6[%c7, %c0_37] : memref<12x128xf32, #tpu.memory_space<vmem>>, vector<1x128xf32>
    %c4_38 = arith.constant 4 : index
    %c0_39 = arith.constant 0 : index
    %c0_40 = arith.constant 0 : index
    %63 = vector.load %arg5[%c4_38, %c0_39, %c0_40] : memref<8x128x128xbf16, #tpu.memory_space<vmem>>, vector<1x128x128xbf16>
    %64 = vector.shape_cast %63 : vector<1x128x128xbf16> to vector<128x128xbf16>
    %c8 = arith.constant 8 : index
    %c0_41 = arith.constant 0 : index
    %65 = vector.load %arg6[%c8, %c0_41] : memref<12x128xf32, #tpu.memory_space<vmem>>, vector<1x128xf32>
    %cst_42 = arith.constant dense<0.000000e+00> : vector<12x128xf32>
    %66 = tpu.matmul %40, %58, %cst_42 {dimension_numbers = #tpu.dot_dimension_numbers<[1], [0], [0], [1], [0, 0, 1, 1], [], []>} : vector<12x128xbf16>, vector<128x128xbf16>, vector<12x128xf32> -> vector<12x128xf32>
    %67 = vector.broadcast %59 : vector<1x128xf32> to vector<12x128xf32>
    %68 = arith.addf %66, %67 : vector<12x128xf32>
    %69 = arith.truncf %22 : vector<8x128xf32> to vector<8x128xbf16>
    %cst_43 = arith.constant dense<0.000000e+00> : vector<12x128xf32>
    %70 = tpu.matmul %48, %69, %cst_43 {dimension_numbers = #tpu.dot_dimension_numbers<[1], [0], [0], [1], [0, 0, 1, 1], [], []>} : vector<12x8xbf16>, vector<8x128xbf16>, vector<12x128xf32> -> vector<12x128xf32>
    %71 = arith.addf %70, %68 : vector<12x128xf32>
    %cst_44 = arith.constant 0.000000e+00 : f32
    %72 = vector.broadcast %cst_44 : f32 to vector<12x128xf32>
    %73 = arith.maximumf %71, %72 : vector<12x128xf32>
    %74 = arith.truncf %73 : vector<12x128xf32> to vector<12x128xbf16>
    %cst_45 = arith.constant dense<0.000000e+00> : vector<8x128xf32>
    %75 = tpu.matmul %56, %74, %cst_45 {dimension_numbers = #tpu.dot_dimension_numbers<[1], [0], [0], [1], [0, 0, 1, 1], [], []>} : vector<8x12xbf16>, vector<12x128xbf16>, vector<8x128xf32> -> vector<8x128xf32>
    %76 = arith.addf %75, %22 : vector<8x128xf32>
    %77 = arith.truncf %76 : vector<8x128xf32> to vector<8x128xbf16>
    %cst_46 = arith.constant dense<0.000000e+00> : vector<8x128xf32>
    %78 = tpu.matmul %77, %61, %cst_46 {dimension_numbers = #tpu.dot_dimension_numbers<[1], [0], [0], [1], [0, 0, 1, 1], [], []>} : vector<8x128xbf16>, vector<128x128xbf16>, vector<8x128xf32> -> vector<8x128xf32>
    %79 = vector.broadcast %62 : vector<1x128xf32> to vector<8x128xf32>
    %80 = arith.addf %78, %79 : vector<8x128xf32>
    %cst_47 = arith.constant 0.000000e+00 : f32
    %81 = vector.broadcast %cst_47 : f32 to vector<8x128xf32>
    %82 = arith.maximumf %80, %81 : vector<8x128xf32>
    %83 = arith.truncf %82 : vector<8x128xf32> to vector<8x128xbf16>
    %cst_48 = arith.constant dense<0.000000e+00> : vector<8x128xf32>
    %84 = tpu.matmul %83, %64, %cst_48 {dimension_numbers = #tpu.dot_dimension_numbers<[1], [0], [0], [1], [0, 0, 1, 1], [], []>} : vector<8x128xbf16>, vector<128x128xbf16>, vector<8x128xf32> -> vector<8x128xf32>
    %85 = vector.broadcast %65 : vector<1x128xf32> to vector<8x128xf32>
    %86 = arith.addf %84, %85 : vector<8x128xf32>
    %cst_49 = arith.constant 0.000000e+00 : f32
    %87 = vector.broadcast %cst_49 : f32 to vector<8x128xf32>
    %88 = arith.maximumf %86, %87 : vector<8x128xf32>
    %c5_50 = arith.constant 5 : index
    %c0_51 = arith.constant 0 : index
    %c0_52 = arith.constant 0 : index
    %89 = vector.load %arg5[%c5_50, %c0_51, %c0_52] : memref<8x128x128xbf16, #tpu.memory_space<vmem>>, vector<1x128x128xbf16>
    %90 = vector.shape_cast %89 : vector<1x128x128xbf16> to vector<128x128xbf16>
    %c9 = arith.constant 9 : index
    %c0_53 = arith.constant 0 : index
    %91 = vector.load %arg6[%c9, %c0_53] : memref<12x128xf32, #tpu.memory_space<vmem>>, vector<1x128xf32>
    %c6_54 = arith.constant 6 : index
    %c0_55 = arith.constant 0 : index
    %c0_56 = arith.constant 0 : index
    %92 = vector.load %arg5[%c6_54, %c0_55, %c0_56] : memref<8x128x128xbf16, #tpu.memory_space<vmem>>, vector<1x128x128xbf16>
    %93 = vector.shape_cast %92 : vector<1x128x128xbf16> to vector<128x128xbf16>
    %c10 = arith.constant 10 : index
    %c0_57 = arith.constant 0 : index
    %94 = vector.load %arg6[%c10, %c0_57] : memref<12x128xf32, #tpu.memory_space<vmem>>, vector<1x128xf32>
    %c7_58 = arith.constant 7 : index
    %c0_59 = arith.constant 0 : index
    %c0_60 = arith.constant 0 : index
    %95 = vector.load %arg5[%c7_58, %c0_59, %c0_60] : memref<8x128x128xbf16, #tpu.memory_space<vmem>>, vector<1x128x128xbf16>
    %96 = vector.shape_cast %95 : vector<1x128x128xbf16> to vector<128x128xbf16>
    %c11 = arith.constant 11 : index
    %c0_61 = arith.constant 0 : index
    %97 = vector.load %arg6[%c11, %c0_61] : memref<12x128xf32, #tpu.memory_space<vmem>>, vector<1x128xf32>
    %cst_62 = arith.constant dense<0.000000e+00> : vector<12x128xf32>
    %98 = tpu.matmul %40, %90, %cst_62 {dimension_numbers = #tpu.dot_dimension_numbers<[1], [0], [0], [1], [0, 0, 1, 1], [], []>} : vector<12x128xbf16>, vector<128x128xbf16>, vector<12x128xf32> -> vector<12x128xf32>
    %99 = vector.broadcast %91 : vector<1x128xf32> to vector<12x128xf32>
    %100 = arith.addf %98, %99 : vector<12x128xf32>
    %101 = arith.truncf %88 : vector<8x128xf32> to vector<8x128xbf16>
    %cst_63 = arith.constant dense<0.000000e+00> : vector<12x128xf32>
    %102 = tpu.matmul %48, %101, %cst_63 {dimension_numbers = #tpu.dot_dimension_numbers<[1], [0], [0], [1], [0, 0, 1, 1], [], []>} : vector<12x8xbf16>, vector<8x128xbf16>, vector<12x128xf32> -> vector<12x128xf32>
    %103 = arith.addf %102, %100 : vector<12x128xf32>
    %cst_64 = arith.constant 0.000000e+00 : f32
    %104 = vector.broadcast %cst_64 : f32 to vector<12x128xf32>
    %105 = arith.maximumf %103, %104 : vector<12x128xf32>
    %106 = arith.truncf %105 : vector<12x128xf32> to vector<12x128xbf16>
    %cst_65 = arith.constant dense<0.000000e+00> : vector<8x128xf32>
    %107 = tpu.matmul %56, %106, %cst_65 {dimension_numbers = #tpu.dot_dimension_numbers<[1], [0], [0], [1], [0, 0, 1, 1], [], []>} : vector<8x12xbf16>, vector<12x128xbf16>, vector<8x128xf32> -> vector<8x128xf32>
    %108 = arith.addf %107, %88 : vector<8x128xf32>
    %109 = arith.truncf %108 : vector<8x128xf32> to vector<8x128xbf16>
    %cst_66 = arith.constant dense<0.000000e+00> : vector<8x128xf32>
    %110 = tpu.matmul %109, %93, %cst_66 {dimension_numbers = #tpu.dot_dimension_numbers<[1], [0], [0], [1], [0, 0, 1, 1], [], []>} : vector<8x128xbf16>, vector<128x128xbf16>, vector<8x128xf32> -> vector<8x128xf32>
    %111 = vector.broadcast %94 : vector<1x128xf32> to vector<8x128xf32>
    %112 = arith.addf %110, %111 : vector<8x128xf32>
    %cst_67 = arith.constant 0.000000e+00 : f32
    %113 = vector.broadcast %cst_67 : f32 to vector<8x128xf32>
    %114 = arith.maximumf %112, %113 : vector<8x128xf32>
    %115 = arith.truncf %114 : vector<8x128xf32> to vector<8x128xbf16>
    %cst_68 = arith.constant dense<0.000000e+00> : vector<8x128xf32>
    %116 = tpu.matmul %115, %96, %cst_68 {dimension_numbers = #tpu.dot_dimension_numbers<[1], [0], [0], [1], [0, 0, 1, 1], [], []>} : vector<8x128xbf16>, vector<128x128xbf16>, vector<8x128xf32> -> vector<8x128xf32>
    %117 = vector.broadcast %97 : vector<1x128xf32> to vector<8x128xf32>
    %118 = arith.addf %116, %117 : vector<8x128xf32>
    %cst_69 = arith.constant 0.000000e+00 : f32
    %119 = vector.broadcast %cst_69 : f32 to vector<8x128xf32>
    %120 = arith.maximumf %118, %119 : vector<8x128xf32>
    %121 = tpu.iota {dimensions = array<i32: 0>} : vector<2x8xi32>
    %c0_70 = arith.constant 0 : index
    %c0_71 = arith.constant 0 : index
    %122 = vector.load %arg4[%c0_70, %c0_71] : memref<1x8xi32, #tpu.memory_space<vmem>>, vector<1x8xi32>
    %123 = vector.broadcast %122 : vector<1x8xi32> to vector<2x8xi32>
    %124 = arith.cmpi eq, %121, %123 : vector<2x8xi32>
    %cst_72 = arith.constant 1.000000e+00 : f32
    %cst_73 = arith.constant 0.000000e+00 : f32
    %125 = vector.broadcast %cst_72 : f32 to vector<2x8xf32>
    %126 = vector.broadcast %cst_73 : f32 to vector<2x8xf32>
    %127 = arith.select %124, %125, %126 : vector<2x8xi1>, vector<2x8xf32>
    %cst_74 = arith.constant dense<0.000000e+00> : vector<2xf32>
    %128 = vector.multi_reduction <add>, %127, %cst_74 [1] : vector<2x8xf32> to vector<2xf32>
    %129 = vector.shape_cast %128 : vector<2xf32> to vector<2x1xf32>
    %cst_75 = arith.constant 1.000000e+00 : f32
    %130 = vector.broadcast %cst_75 : f32 to vector<2x1xf32>
    %131 = arith.maximumf %129, %130 : vector<2x1xf32>
    %cst_76 = arith.constant dense<0.000000e+00> : vector<2x128xf32>
    %132 = tpu.matmul %127, %120, %cst_76 {dimension_numbers = #tpu.dot_dimension_numbers<[1], [0], [0], [1], [0, 0, 1, 1], [], []>} : vector<2x8xf32>, vector<8x128xf32>, vector<2x128xf32> -> vector<2x128xf32>
    %133 = vector.broadcast %131 : vector<2x1xf32> to vector<2x128xf32>
    %134 = arith.divf %132, %133 : vector<2x128xf32>
    %c0_77 = arith.constant 0 : index
    %c0_78 = arith.constant 0 : index
    %135 = vector.load %arg7[%c0_77, %c0_78] : memref<2x128xf32, #tpu.memory_space<vmem>>, vector<2x128xf32>
    tpu.vector_store %arg7[%c0_77, %c0_78], %134 {strides = array<i32>} : memref<2x128xf32, #tpu.memory_space<vmem>>, vector<2x128xf32>,
    return
  }
}

</mosaic_0001>

<bundles_post_ra>
// kernel: tpu_custom_call.1
= control target key start
LH: loop header
LB: loop body
LE: loop exit
PB: predicated region body
PF: predicated region fallthrough
CT: control target
= control target key end

     0   :  { %12 = vsyncpa [#allocation3], 0  ;;  %s2057_s0 = inlined_call_operand.vmem [shape: f32[8,1], index: 0, kind: input, shape index: {}]   ;;  %s2058_s1 = inlined_call_operand.vmem [shape: f32[12,1], index: 1, kind: input, shape index: {}]   ;;  %s2059_s2 = inlined_call_operand.vmem [shape: s32[12,1], index: 2, kind: input, shape index: {}]   ;;  %s2060_s3 = inlined_call_operand.vmem [shape: s32[1,12], index: 3, kind: input, shape index: {}]   ;;  %s2061_s4 = inlined_call_operand.vmem [shape: s32[1,8], index: 4, kind: input, shape index: {}]   ;;  %s2062_s5 = inlined_call_operand.hbm [shape: bf16[8,128,128], index: 5, kind: input, shape index: {}]   ;;  %s2063_s6 = inlined_call_operand.vmem [shape: f32[12,128], index: 6, kind: input, shape index: {}]   ;;  %s2064_s7 = inlined_call_operand.hbm [shape: f32[2,128], index: 7, kind: output, shape index: {}]  }
   0x1   :  { %13 = vsyncpa [#allocation4], 0  ;;  %s1795_s24 = smov [#allocation2]   ;;  %s1747_s28 = scalar_lea.hbm %s2062_s5, 8192 }
   0x2   :  { %s29_s25 = sshll.u32 %s1795_s24, 4  ;;  %p1748_p0 = scmp.ne.s32.totalorder %s2062_s5, %s1747_s28  ;;  %s30_s25 = int_to_ptr.vmem [resolvable:$true] %s29_s25 }
   0x3   :  { %p1751_p1 = scmp.lt.u32.totalorder %s1747_s28, %s2062_s5 }
   0x5   :  { %p1753_p2 = pnand %p1751_p1, %p1748_p0 }
   0x7   :  { %1756 = shalt.err (!%p1753_p2)
}
   0x8   :  { %s1757_s10 = scalar_lea.vmem %s30_s25, 8192  ;;  %p1762_p4 = scmp.lt.s32.totalorder %s30_s25, %s30_s25 }
   0x9   :  { %p1758_p3 = scmp.ne.s32.totalorder %s30_s25, %s1757_s10  ;;  %p1763_p5 = scmp.lt.s32.totalorder %s1757_s10, %s1757_s10 }
   0xb   :  { %p1764_p6 = por %p1763_p5, %p1762_p4 }
   0xd   :  { %p1765_p7 = pnand %p1764_p6, %p1758_p3 }
   0xf   :  { %1768 = shalt.err (!%p1765_p7)
}
  0x10   :  { %s1796_s11 = smov 64   ;;  %s1797_s12 = smov 4  }
  0x11   :  { %35 = dma.hbm_to_vmem [thread:$0]  %s2062_s5, 8192, %s30_s25, [#allocation3], %s1796_s11, %s1796_s11, %s1797_s12  }
  0x12   :  { %1791 = dma.done.wait [#allocation3], 8192  }
  0x13   :  { %1792 = vsyncadd [#allocation3], 4294959104  ;;  %v1798_v0 = vmov 0   ;;  %v1799_v1 = vmov 0.0   ;;  %v175_v2 = vld [vmem:[%s2058_s1] sm:$0xff]  ;;  %v1681_v6 = vld [vmem:[#allocation2 + $0x40] sm:$0xff]  }
  0x14   :  { %1679 = vset.pattern.permute.xlu0 %v1798_v0  ;;  %1680 = vset.pattern.permute.xlu1 %v1798_v0  ;;  %v42_v3 = vld [vmem:[%s2057_s0] sm:$0xff]  ;;  %v176_v4 = vld [vmem:[%s2058_s1 + $0x8] sm:$0xf]  ;;  %v1682_v8 = vld [vmem:[#allocation2 + $0x48] sm:$0xff]   ;;  %vm1800_vm0 = vmmov 0   ;;  %vm493_vm1 = vcmask 1043456   ;;  %v316_v0 = vlaneseq }
  0x15   :  { %1491 = vmatprep.subr.bf16.mxu1 %v1799_v1  ;;  %1471 = vmatprep.subr.bf16.mxu0 %v1799_v1  ;;  %v44_v5 = vmul.f32 3.5527137e-15, %v42_v3  ;;  %v319_v9 = vld [vmem:[%s2059_s2 + $0x8] sm:$0xf]  ;;  %v1685_v12 = vld [vmem:[#allocation2 + $0x8] sm:$0xff]   ;;  %v318_v13 = vld [vmem:[%s2059_s2] sm:$0xff]  ;;  %vm489_vm4 = vcmask 64512  }
  0x16   :  { %180 = vperm.xlu0 %1679, %v175_v2   ;;  %1492 = vmatpush3.bf16.msra.mxu1 %v1681_v6  ;;  %v1683_v10 = vld [vmem:[#allocation2] sm:$0xff]   ;;  %v1684_v14 = vld [vmem:[#allocation2 + $0x50] sm:$0xff]   ;;  %v1686_v16 = vld [vmem:[#allocation2 + $0x58] sm:$0xff]   ;;  %vm545_vm6 = vcmask 1045504   ;;  %vm541_vm7 = vcmask 97280   ;;  %vm1210_vm9 = vcmask 58368  }
  0x17   :  { %v45_v7 = vmax.f32 %v44_v5, 0.0  ;;  %1493 = vmatprep.subr.bf16.mxu1 %v1799_v1  ;;  %1472 = vmatpush3.bf16.msra.mxu0 %v1683_v10  ;;  %v1687_v15 = vld [vmem:[#allocation2 + $0x10] sm:$0xff]   ;;  %v1689_v17 = vld [vmem:[#allocation2 + $0x18] sm:$0xff]   ;;  %v1688_v18 = vld [vmem:[#allocation2 + $0x60] sm:$0xff]  }
  0x18   :  { %1473 = vmatprep.subr.bf16.mxu0 %v1799_v1  ;;  %1507 = vmatprep.mubr.msk.bf16.mxu1 %vm1800_vm0, %v1799_v1  ;;  %v1691_v19 = vld [vmem:[#allocation2 + $0x20] sm:$0xff]   ;;  %v1690_v20 = vld [vmem:[#allocation2 + $0x68] sm:$0xff]   ;;  %v1692_v21 = vld [vmem:[#allocation2 + $0x70] sm:$0xff]  }
  0x19   :  { %v46_v11 = vmin.f32 %v45_v7, 1.0  ;;  %1487 = vmatprep.mubr.msk.bf16.mxu0 %vm1800_vm0, %v1799_v1  ;;  %v1693_v22 = vld [vmem:[#allocation2 + $0x28] sm:$0xff]   ;;  %v1695_v23 = vld [vmem:[#allocation2 + $0x30] sm:$0xff]   ;;  %v1694_v24 = vld [vmem:[#allocation2 + $0x78] sm:$0xff]   ;;  %v317_v7 = vand.u32 127, %v316_v0 }
  0x1a   :  { %185 = vperm.xlu0 %1679, %v176_v4   ;;  %1494 = vmatpush3.bf16.msra.mxu1 %v1682_v8  ;;  %v1696_v25 = vld [vmem:[#allocation2 + $0x38] sm:$0xff]   ;;  %v1697_v43 = vld [vmem:[#allocation2 + $0x80] sm:$0xff]   ;;  %v1698_v45 = vld [vmem:[#allocation2 + $0x88] sm:$0xff]  }
  0x1b   :  { %50 = vperm.xlu1 %1680, %v46_v11   ;;  %1495 = vmatprep.subr.bf16.mxu1 %v1799_v1  ;;  %v1317_v26 = vld [vmem:[%s2063_s6 + $0x3] ss:$0 sm:$0xff]  ;;  %v1318_v29 = vld [vmem:[%s2063_s6 + $0x4] ss:$0 sm:$0xff]  ;;  %v1306_v31 = vld [vmem:[%s2063_s6] ss:$0 sm:$0xff] }
  0x1c   :  { %1474 = vmatpush3.bf16.msra.mxu0 %v1685_v12  ;;  %v1307_v34 = vld [vmem:[%s2063_s6 + $0x1] ss:$0 sm:$0xff]  ;;  %v1699_v46 = vld [vmem:[#allocation2 + $0x90] sm:$0xff]   ;;  %v1701_v48 = vld [vmem:[#allocation2 + $0xa0] sm:$0xff]  }
  0x1d   :  { %1475 = vmatprep.subr.bf16.mxu0 %v1799_v1  ;;  %v1700_v47 = vld [vmem:[#allocation2 + $0x98] sm:$0xff]   ;;  %v1702_v49 = vld [vmem:[#allocation2 + $0xa8] sm:$0xff]   ;;  %v1703_v50 = vld [vmem:[#allocation2 + $0xb0] sm:$0xff]  }
  0x1e   :  { %324 = vperm.xlu0 %1679, %v319_v9   ;;  %1496 = vmatpush3.bf16.msra.mxu1 %v1684_v14  ;;  %v1704_v51 = vld [vmem:[#allocation2 + $0xb8] sm:$0xff]  }
  0x1f   :  { %321 = vperm.xlu1 %1680, %v318_v13   ;;  %1497 = vmatprep.subr.bf16.mxu1 %v1799_v1  ;;  %v1319_v52 = vld [vmem:[%s2063_s6 + $0x5] ss:$0 sm:$0xff]  ;;  %v1308_v54 = vld [vmem:[%s2063_s6 + $0x2] ss:$0 sm:$0xff]  ;;  %v1329_v12 = vld [vmem:[%s2063_s6 + $0x6] ss:$0 sm:$0xff] }
  0x20   :  { %1476 = vmatpush3.bf16.msra.mxu0 %v1687_v15  ;;  %v1943_v13 = vshrl.u32 %v316_v0, 7  ;;  %v1328_v14 = vld [vmem:[%s2060_s3] ss:$0 sm:$0xff] }
  0x21   :  { %1477 = vmatprep.subr.bf16.mxu0 %v1799_v1 }
  0x22   :  { %1498 = vmatpush3.bf16.msra.mxu1 %v1686_v16  ;;  %vm338_vm5 = vcmp.eq.s32.totalorder %v1943_v13, %v1328_v14 }
  0x23   :  { %1499 = vmatprep.subr.bf16.mxu1 %v1799_v1 }
  0x24   :  { %1478 = vmatpush3.bf16.msra.mxu0 %v1689_v17 }
  0x25   :  { %1479 = vmatprep.subr.bf16.mxu0 %v1799_v1 }
  0x26   :  { %1500 = vmatpush3.bf16.msra.mxu1 %v1688_v18 }
  0x27   :  { %1501 = vmatprep.subr.bf16.mxu1 %v1799_v1 }
  0x28   :  { %1480 = vmatpush3.bf16.msra.mxu0 %v1691_v19 }
  0x29   :  { %1481 = vmatprep.subr.bf16.mxu0 %v1799_v1 }
  0x2a   :  { %1502 = vmatpush3.bf16.msra.mxu1 %v1690_v20 }
  0x2b   :  { %1503 = vmatprep.subr.bf16.mxu1 %v1799_v1 }
  0x2c   :  { %1482 = vmatpush3.bf16.msra.mxu0 %v1693_v22 }
  0x2d   :  { %1483 = vmatprep.subr.bf16.mxu0 %v1799_v1 }
  0x2e   :  { %1504 = vmatpush3.bf16.msra.mxu1 %v1692_v21 }
  0x2f   :  { %1505 = vmatprep.subr.bf16.mxu1 %v1799_v1 }
  0x30   :  { %1484 = vmatpush3.bf16.msra.mxu0 %v1695_v23  ;;  %v339_v23 = vsel %vm338_vm5, 1.0, %v1799_v1 }
  0x31   :  { %1485 = vmatprep.subr.bf16.mxu0 %v1799_v1 }
  0x32   :  { %1506 = vmatpush3.bf16.msra.mxu1 %v1694_v24 }
  0x33   :  { %1537 = vmatprep.subr.bf16.mxu1 %v1799_v1 }
  0x34   :  { %1486 = vmatpush3.bf16.msra.mxu0 %v1696_v25  ;;  %v1950_v25 = vpack.c.bf16 %v339_v23, %v339_v23 }
  0x35   :  { %1511 = vmatprep.subr.bf16.mxu0 %v1799_v1 }
  0x95   :  { %v181_v27 = vpop.permute.xlu0 %180 }
  0x96   :  { %v192_v28 = vmul.f32 %v1317_v26, %v181_v27  ;;  %v1705_v27 = vld [vmem:[#allocation2 + $0xc0] sm:$0xff]  }
  0x98   :  { %v199_v32 = vadd.f32 %v1318_v29, %v192_v28  ;;  %v1706_v28 = vld [vmem:[#allocation2 + $0xc8] sm:$0xff]  }
  0x99   :  { %v186_v30 = vpop.permute.xlu0 %185 }
  0x9a   :  { %v193_v33 = vmul.f32 %v1317_v26, %v186_v30  ;;  %v51_v35 = vpop.permute.xlu1 %50  ;;  %v201_v38 = vmax.f32 %v199_v32, 0.0  ;;  %v1708_v30 = vld [vmem:[#allocation2 + $0xd8] sm:$0xff]   ;;  %v1710_v32 = vld [vmem:[#allocation2 + $0xe8] sm:$0xff]  }
  0x9b   :  { %v57_v37 = vmul.f32 %v1306_v31, %v51_v35  ;;  %v1709_v31 = vld [vmem:[#allocation2 + $0xe0] sm:$0xff]  }
  0x9c   :  { %v200_v36 = vadd.f32 %v1318_v29, %v193_v33  ;;  %v1707_v29 = vld [vmem:[#allocation2 + $0xd0] sm:$0xff]   ;;  %v1721_v35 = vld [vmem:[#allocation2 + $0x100] sm:$0xff]  }
  0x9d   :  { %v63_v40 = vadd.f32 %v1307_v34, %v57_v37  ;;  %v325_v8 = vpop.permute.xlu0 %324  ;;  %v1711_v33 = vld [vmem:[#allocation2 + $0xf0] sm:$0xff]   ;;  %v1712_v34 = vld [vmem:[#allocation2 + $0xf8] sm:$0xff]  }
  0x9e   :  { %v202_v39 = vmax.f32 %v200_v36, 0.0  ;;  %v322_v6 = vpop.permute.xlu1 %321  ;;  %vm327_vm3 = vcmp.eq.s32.totalorder %v317_v7, %v325_v8  ;;  %v1722_v36 = vld [vmem:[#allocation2 + $0x108] sm:$0xff]   ;;  %v1723_v37 = vld [vmem:[#allocation2 + $0x110] sm:$0xff]  }
  0x9f   :  { %v64_v41 = vmax.f32 %v63_v40, 0.0  ;;  %vm326_vm2 = vcmp.eq.s32.totalorder %v317_v7, %v322_v6  ;;  %v329_v10 = vsel %vm327_vm3, 1.0, %v1799_v1  ;;  %v1726_v40 = vld [vmem:[#allocation2 + $0x128] sm:$0xff]  }
  0xa0   :  { %v203_v42 = vpack.c.bf16 %v202_v39, %v201_v38  ;;  %v328_v9 = vsel %vm326_vm2, 1.0, %v1799_v1  ;;  %v1724_v38 = vld [vmem:[#allocation2 + $0x118] sm:$0xff]   ;;  %v1725_v39 = vld [vmem:[#allocation2 + $0x120] sm:$0xff]  }
  0xa1   :  { %v65_v44 = vpack.c.bf16 %v64_v41, %v64_v41  ;;  %v1934_v11 = vpack.c.bf16 %v329_v10, %v328_v9 }
  0xa2   :  { %1508 = vmatmul.mubr.bf16.vlgmr.msra.gmra.mrb[0].mxu1 %v203_v42 }
  0xa3   :  { %1539 = vmatprep.mubr.msk.bf16.mxu1 %vm1800_vm0, %v1799_v1  ;;  %1488 = vmatmul.mubr.bf16.vlgmr.msra.gmra.mrb[0].mxu0 %v65_v44 }
  0xa4   :  { %1512 = vmatpush3.bf16.msra.mxu0 %v1697_v43  ;;  %1527 = vmatprep.mubr.msk.bf16.mxu0 %vm1800_vm0, %v1799_v1 }
  0xa5   :  { %1513 = vmatprep.subr.bf16.mxu0 %v1799_v1 }
  0xa8   :  { %1514 = vmatpush3.bf16.msra.mxu0 %v1698_v45  ;;  %v1713_v45 = vld [vmem:[#allocation2 + $0x140] sm:$0xff]  }
  0xa9   :  { %1515 = vmatprep.subr.bf16.mxu0 %v1799_v1 }
  0xac   :  { %1516 = vmatpush3.bf16.msra.mxu0 %v1699_v46 }
  0xad   :  { %1517 = vmatprep.subr.bf16.mxu0 %v1799_v1 }
  0xb0   :  { %1518 = vmatpush3.bf16.msra.mxu0 %v1700_v47 }
  0xb1   :  { %1519 = vmatprep.subr.bf16.mxu0 %v1799_v1 }
  0xb4   :  { %1520 = vmatpush3.bf16.msra.mxu0 %v1701_v48  ;;  %v1714_v48 = vld [vmem:[#allocation2 + $0x148] sm:$0xff]  }
  0xb5   :  { %1521 = vmatprep.subr.bf16.mxu0 %v1799_v1 }
  0xb8   :  { %1522 = vmatpush3.bf16.msra.mxu0 %v1702_v49  ;;  %v1715_v49 = vld [vmem:[#allocation2 + $0x150] sm:$0xff]  }
  0xb9   :  { %1523 = vmatprep.subr.bf16.mxu0 %v1799_v1 }
  0xbc   :  { %1524 = vmatpush3.bf16.msra.mxu0 %v1703_v50  ;;  %v1716_v50 = vld [vmem:[#allocation2 + $0x158] sm:$0xff]  }
  0xbd   :  { %1525 = vmatprep.subr.bf16.mxu0 %v1799_v1 }
  0xc0   :  { %1526 = vmatpush3.bf16.msra.mxu0 %v1704_v51  ;;  %v1717_v51 = vld [vmem:[#allocation2 + $0x160] sm:$0xff]  }
  0xc1   :  { %1531 = vmatprep.subr.bf16.mxu0 %v1799_v1 }
 0x175   :  { %v308_v53 = vpop.f32.mrb[0].mxu1 }
 0x176   :  { %v1509_v55 = vpop.f32.mrb[1].mxu1  ;;  %v169_v57 = vpop.f32.mrb[0].mxu0  ;;  %v309_v58 = vadd.f32 %v1319_v52, %v308_v53  ;;  %v1719_v53 = vld [vmem:[#allocation2 + $0x170] sm:$0xff]  }
 0x177   :  { %v311_v56 = vpop.f32.mrb[2].mxu1  ;;  %v1921_v61 = vadd.f32 %v1308_v54, %v169_v57  ;;  %v1489_v62 = vpop.f32.mrb[1].mxu0  ;;  %v1720_v54 = vld [vmem:[#allocation2 + $0x178] sm:$0xff]   ;;  %v1727_v55 = vld [vmem:[#allocation2 + $0x130] sm:$0xff]  }
 0x178   :  { %v312_v59 = vadd.f32 %v1319_v52, %v311_v56  ;;  %v1510_v60 = vpop.f32.mrb[3].mxu1  ;;  %v172_v63 = vpop.f32.mrb[2].mxu0  ;;  %v1718_v52 = vld [vmem:[#allocation2 + $0x168] sm:$0xff]   ;;  %v1728_v56 = vld [vmem:[#allocation2 + $0x138] sm:$0xff]  }
 0x179   :  { %v488_v3 = vpack.c.bf16 %v1921_v61, %v1921_v61  ;;  %v1490_v4 = vpop.f32.mrb[3].mxu0  ;;  %v1340_v57 = vld [vmem:[%s2063_s6 + $0x7] ss:$0 sm:$0xff] }
 0x17a   :  { %v1923_v2 = vpack.c.bf16 %v312_v59, %v309_v58 }
 0x17b   :  { %v495_v5 = vsel %vm493_vm1, %v488_v3, 0 }
 0x17c   :  { %1528 = vmatmul.mubr.bf16.vlgmr.msra.gmra.mrb[4].mxu0 %v1923_v2 }
 0x17d   :  { %1532 = vmatpush3.bf16.msra.mxu0 %v495_v5  ;;  %1533 = vmatprep.mubr.msk.bf16.mxu0 %vm1800_vm0, %v1799_v1 }
 0x17e   :  { %1563 = vmatprep.subr.bf16.mxu0 %v1799_v1 }
 0x188   :  { %1534 = vmatmul.mubr.msk.bf16.vlgmr.msra.gmra.mrb[4].mxu0 %vm489_vm4, %v1934_v11 }
 0x189   :  { %1579 = vmatprep.mubr.msk.bf16.mxu0 %vm1800_vm0, %v1799_v1  ;;  %1564 = vmatpush3.bf16.msra.mxu0 %v1721_v35  ;;  %v1741_v35 = vld [vmem:[#allocation2 + $0x1e0] sm:$0xff]  }
 0x18a   :  { %1565 = vmatprep.subr.bf16.mxu0 %v1799_v1 }
 0x18d   :  { %1566 = vmatpush3.bf16.msra.mxu0 %v1722_v36  ;;  %v1742_v36 = vld [vmem:[#allocation2 + $0x1e8] sm:$0xff]  }
 0x18e   :  { %1567 = vmatprep.subr.bf16.mxu0 %v1799_v1 }
 0x191   :  { %1568 = vmatpush3.bf16.msra.mxu0 %v1723_v37 }
 0x192   :  { %1569 = vmatprep.subr.bf16.mxu0 %v1799_v1 }
 0x195   :  { %1570 = vmatpush3.bf16.msra.mxu0 %v1724_v38 }
 0x196   :  { %1571 = vmatprep.subr.bf16.mxu0 %v1799_v1 }
 0x199   :  { %1572 = vmatpush3.bf16.msra.mxu0 %v1725_v39 }
 0x19a   :  { %1573 = vmatprep.subr.bf16.mxu0 %v1799_v1 }
 0x19d   :  { %1574 = vmatpush3.bf16.msra.mxu0 %v1726_v40 }
 0x19e   :  { %1575 = vmatprep.subr.bf16.mxu0 %v1799_v1 }
 0x1a1   :  { %1576 = vmatpush3.bf16.msra.mxu0 %v1727_v55 }
 0x1a2   :  { %1577 = vmatprep.subr.bf16.mxu0 %v1799_v1 }
 0x1a5   :  { %1578 = vmatpush3.bf16.msra.mxu0 %v1728_v56  ;;  %v1378_v56 = vld [vmem:[%s2063_s6 + $0xb] ss:$0 sm:$0xff] }
 0x1a6   :  { %1609 = vmatprep.subr.bf16.mxu0 %v1799_v1 }
 0x25b   :  { %v531_v15 = vpop.f32.mrb[4].mxu0 }
 0x25c   :  { %v1660_v16 = vadd.f32 %v1329_v12, %v531_v15  ;;  %v1535_v17 = vpop.f32.mrb[5].mxu0 }
 0x25d   :  { %v534_v18 = vpop.f32.mrb[6].mxu0 }
 0x25e   :  { %v1661_v19 = vadd.f32 %v1329_v12, %v534_v18  ;;  %v1536_v20 = vpop.f32.mrb[7].mxu0  ;;  %v538_v21 = vmax.f32 %v1660_v16, 0.0  ;;  %v1358_v12 = vld [vmem:[%s2063_s6 + $0x9] ss:$0 sm:$0xff] }
 0x260   :  { %v539_v22 = vmax.f32 %v1661_v19, 0.0 }
 0x262   :  { %v540_v24 = vpack.c.bf16 %v539_v22, %v538_v21 }
 0x264   :  { %v547_v26 = vsel %vm545_vm6, %v540_v24, 0  ;;  %v1730_v24 = vld [vmem:[#allocation2 + $0x188] sm:$0xff]  }
 0x265   :  { %1538 = vmatpush3.bf16.msra.mxu1 %v547_v26  ;;  %v1731_v26 = vld [vmem:[#allocation2 + $0x190] sm:$0xff]  }
 0x266   :  { %1543 = vmatprep.subr.bf16.mxu1 %v1799_v1 }
 0x268   :  { %1540 = vmatmul.mubr.msk.bf16.vlgmr.msra.gmra.mrb[4].mxu1 %vm541_vm7, %v1950_v25 }
 0x269   :  { %1544 = vmatpush3.bf16.msra.mxu1 %v1705_v27  ;;  %1559 = vmatprep.mubr.msk.bf16.mxu1 %vm1800_vm0, %v1799_v1  ;;  %v1732_v27 = vld [vmem:[#allocation2 + $0x198] sm:$0xff]  }
 0x26a   :  { %1545 = vmatprep.subr.bf16.mxu1 %v1799_v1 }
 0x26d   :  { %1546 = vmatpush3.bf16.msra.mxu1 %v1706_v28  ;;  %v1733_v28 = vld [vmem:[#allocation2 + $0x1a0] sm:$0xff]  }
 0x26e   :  { %1547 = vmatprep.subr.bf16.mxu1 %v1799_v1 }
 0x271   :  { %1548 = vmatpush3.bf16.msra.mxu1 %v1707_v29  ;;  %v1735_v29 = vld [vmem:[#allocation2 + $0x1b0] sm:$0xff]  }
 0x272   :  { %1549 = vmatprep.subr.bf16.mxu1 %v1799_v1 }
 0x275   :  { %1550 = vmatpush3.bf16.msra.mxu1 %v1708_v30  ;;  %v1736_v30 = vld [vmem:[#allocation2 + $0x1b8] sm:$0xff]  }
 0x276   :  { %1551 = vmatprep.subr.bf16.mxu1 %v1799_v1 }
 0x279   :  { %1552 = vmatpush3.bf16.msra.mxu1 %v1709_v31  ;;  %v1737_v31 = vld [vmem:[#allocation2 + $0x1c0] sm:$0xff]  }
 0x27a   :  { %1553 = vmatprep.subr.bf16.mxu1 %v1799_v1 }
 0x27d   :  { %1554 = vmatpush3.bf16.msra.mxu1 %v1710_v32  ;;  %v1738_v32 = vld [vmem:[#allocation2 + $0x1c8] sm:$0xff]  }
 0x27e   :  { %1555 = vmatprep.subr.bf16.mxu1 %v1799_v1 }
 0x281   :  { %1556 = vmatpush3.bf16.msra.mxu1 %v1711_v33  ;;  %v1739_v33 = vld [vmem:[#allocation2 + $0x1d0] sm:$0xff]  }
 0x282   :  { %1557 = vmatprep.subr.bf16.mxu1 %v1799_v1 }
 0x285   :  { %1558 = vmatpush3.bf16.msra.mxu1 %v1712_v34  ;;  %v1740_v34 = vld [vmem:[#allocation2 + $0x1d8] sm:$0xff]  }
 0x286   :  { %1583 = vmatprep.subr.bf16.mxu1 %v1799_v1 }
 0x33b   :  { %v583_v41 = vpop.f32.mrb[4].mxu1 }
 0x33c   :  { %v584_v42 = vadd.f32 %v583_v41, %v1921_v61  ;;  %v1541_v43 = vpop.f32.mrb[5].mxu1 }
 0x33d   :  { %v586_v44 = vpop.f32.mrb[6].mxu1  ;;  %v1743_v43 = vld [vmem:[#allocation2 + $0x1f0] sm:$0xff]  }
 0x33e   :  { %v589_v46 = vpack.c.bf16 %v584_v42, %v584_v42  ;;  %v1542_v47 = vpop.f32.mrb[7].mxu1  ;;  %v1744_v44 = vld [vmem:[#allocation2 + $0x1f8] sm:$0xff]  }
 0x340   :  { %1560 = vmatmul.mubr.bf16.vlgmr.msra.gmra.mrb[8].mxu1 %v589_v46 }
 0x341   :  { %1584 = vmatpush3.bf16.msra.mxu1 %v1713_v45  ;;  %1599 = vmatprep.mubr.msk.bf16.mxu1 %vm1800_vm0, %v1799_v1  ;;  %v1369_v45 = vld [vmem:[%s2063_s6 + $0xa] ss:$0 sm:$0xff] }
 0x342   :  { %1585 = vmatprep.subr.bf16.mxu1 %v1799_v1 }
 0x345   :  { %1586 = vmatpush3.bf16.msra.mxu1 %v1714_v48 }
 0x346   :  { %1587 = vmatprep.subr.bf16.mxu1 %v1799_v1 }
 0x349   :  { %1588 = vmatpush3.bf16.msra.mxu1 %v1715_v49 }
 0x34a   :  { %1589 = vmatprep.subr.bf16.mxu1 %v1799_v1 }
 0x34d   :  { %1590 = vmatpush3.bf16.msra.mxu1 %v1716_v50 }
 0x34e   :  { %1591 = vmatprep.subr.bf16.mxu1 %v1799_v1 }
 0x351   :  { %1592 = vmatpush3.bf16.msra.mxu1 %v1717_v51 }
 0x352   :  { %1593 = vmatprep.subr.bf16.mxu1 %v1799_v1 }
 0x355   :  { %1594 = vmatpush3.bf16.msra.mxu1 %v1718_v52 }
 0x356   :  { %1595 = vmatprep.subr.bf16.mxu1 %v1799_v1 }
 0x359   :  { %1596 = vmatpush3.bf16.msra.mxu1 %v1719_v53  ;;  %v1387_v53 = vld [vmem:[%s2061_s4] ss:$0 sm:$0xff]  ;;  %s1801_s4 = smov [#allocation5]  }
 0x35a   :  { %1597 = vmatprep.subr.bf16.mxu1 %v1799_v1  ;;  %vm1208_vm8 = vcmp.eq.s32.totalorder %v1943_v13, %v1387_v53  ;;  %s1297_s1 = sshll.u32 %s1801_s4, 4  ;;  %s1298_s1 = int_to_ptr.vmem [resolvable:$true] %s1297_s1 }
 0x35b   :  { %p1774_p9 = scmp.lt.s32.totalorder %s1298_s1, %s1298_s1 }
 0x35d   :  { %1598 = vmatpush3.bf16.msra.mxu1 %v1720_v54  ;;  %v1209_v54 = vsel %vm1208_vm8, 1.0, %v1799_v1 }
 0x35e   :  { %1603 = vmatprep.subr.bf16.mxu1 %v1799_v1  ;;  %v1211_v55 = vsel %vm1210_vm9, %v1209_v54, 0.0 }
 0x35f   :  { %1212 = vadd.xlane.f32.xlu1 %v1211_v55 }
 0x360   :  { %1600 = vmatmul.mubr.bf16.vlgmr.msra.gmra.mrb[12].mxu1 %v1923_v2  ;;  %v1349_v2 = vld [vmem:[%s2063_s6 + $0x8] ss:$0 sm:$0xff]  ;;  %s1769_s6 = scalar_lea.vmem %s1298_s1, 32 }
 0x361   :  { %1605 = vmatprep.mubr.msk.bf16.mxu1 %vm1800_vm0, %v1799_v1  ;;  %p1770_p8 = scmp.ne.s32.totalorder %s1298_s1, %s1769_s6  ;;  %p1775_p10 = scmp.lt.s32.totalorder %s1769_s6, %s1769_s6 }
 0x363   :  { %p1776_p11 = por %p1775_p10, %p1774_p9 }
 0x365   :  { %p1777_p12 = pnand %p1776_p11, %p1770_p8 }
 0x413   :  { %v676_v58 = vpop.f32.mrb[8].mxu1 }
 0x414   :  { %v677_v59 = vadd.f32 %v1340_v57, %v676_v58  ;;  %v1561_v60 = vpop.f32.mrb[9].mxu1 }
 0x415   :  { %v679_v61 = vpop.f32.mrb[10].mxu1 }
 0x416   :  { %v682_v62 = vmax.f32 %v677_v59, 0.0  ;;  %v1562_v63 = vpop.f32.mrb[11].mxu1 }
 0x417   :  { %v1213_v63 = vpop.xlane.xlu1 %1212 }
 0x418   :  { %v683_v0 = vpack.c.bf16 %v682_v62, %v682_v62  ;;  %v1214_v13 = vmax.f32 %v1213_v63, 1.0 }
 0x41a   :  { %1580 = vmatmul.mubr.bf16.vlgmr.msra.gmra.mrb[8].mxu0 %v683_v0  ;;  %1745 = vrcp.f32 %v1214_v13 }
 0x41b   :  { %1611 = vmatprep.mubr.msk.bf16.mxu0 %vm1800_vm0, %v1799_v1 }
 0x4ed   :  { %v770_v3 = vpop.f32.mrb[8].mxu0 }
 0x4ee   :  { %v771_v4 = vadd.f32 %v1349_v2, %v770_v3  ;;  %v1581_v5 = vpop.f32.mrb[9].mxu0 }
 0x4ef   :  { %v773_v6 = vpop.f32.mrb[10].mxu0 }
 0x4f0   :  { %v1996_v7 = vmax.f32 %v771_v4, 0.0  ;;  %v1582_v8 = vpop.f32.mrb[11].mxu0 }
 0x4f2   :  { %v924_v9 = vpack.c.bf16 %v1996_v7, %v1996_v7 }
 0x4f4   :  { %v926_v10 = vsel %vm493_vm1, %v924_v9, 0 }
 0x4f5   :  { %1604 = vmatpush3.bf16.msra.mxu1 %v926_v10 }
 0x4f6   :  { %1635 = vmatprep.subr.bf16.mxu1 %v1799_v1 }
 0x4f8   :  { %1606 = vmatmul.mubr.msk.bf16.vlgmr.msra.gmra.mrb[12].mxu1 %vm489_vm4, %v1934_v11  ;;  %v1729_v11 = vld [vmem:[#allocation2 + $0x180] sm:$0xff]  }
 0x4f9   :  { %1651 = vmatprep.mubr.msk.bf16.mxu1 %vm1800_vm0, %v1799_v1  ;;  %1636 = vmatpush3.bf16.msra.mxu1 %v1737_v31 }
 0x4fa   :  { %1637 = vmatprep.subr.bf16.mxu1 %v1799_v1 }
 0x4fd   :  { %1638 = vmatpush3.bf16.msra.mxu1 %v1738_v32 }
 0x4fe   :  { %1639 = vmatprep.subr.bf16.mxu1 %v1799_v1 }
 0x501   :  { %1640 = vmatpush3.bf16.msra.mxu1 %v1739_v33 }
 0x502   :  { %1641 = vmatprep.subr.bf16.mxu1 %v1799_v1 }
 0x505   :  { %1642 = vmatpush3.bf16.msra.mxu1 %v1740_v34 }
 0x506   :  { %1643 = vmatprep.subr.bf16.mxu1 %v1799_v1 }
 0x509   :  { %1644 = vmatpush3.bf16.msra.mxu1 %v1741_v35 }
 0x50a   :  { %1645 = vmatprep.subr.bf16.mxu1 %v1799_v1 }
 0x50d   :  { %1646 = vmatpush3.bf16.msra.mxu1 %v1742_v36 }
 0x50e   :  { %1647 = vmatprep.subr.bf16.mxu1 %v1799_v1 }
 0x511   :  { %1648 = vmatpush3.bf16.msra.mxu1 %v1743_v43 }
 0x512   :  { %1649 = vmatprep.subr.bf16.mxu1 %v1799_v1 }
 0x515   :  { %1650 = vmatpush3.bf16.msra.mxu1 %v1744_v44 }
 0x5cb   :  { %v962_v14 = vpop.f32.mrb[12].mxu1 }
 0x5cc   :  { %v1662_v15 = vadd.f32 %v1358_v12, %v962_v14  ;;  %v1607_v16 = vpop.f32.mrb[13].mxu1 }
 0x5cd   :  { %v965_v17 = vpop.f32.mrb[14].mxu1 }
 0x5ce   :  { %v1663_v18 = vadd.f32 %v1358_v12, %v965_v17  ;;  %v1608_v19 = vpop.f32.mrb[15].mxu1  ;;  %v969_v20 = vmax.f32 %v1662_v15, 0.0 }
 0x5d0   :  { %v970_v21 = vmax.f32 %v1663_v18, 0.0 }
 0x5d2   :  { %v971_v22 = vpack.c.bf16 %v970_v21, %v969_v20 }
 0x5d4   :  { %v973_v23 = vsel %vm545_vm6, %v971_v22, 0 }
 0x5d5   :  { %1610 = vmatpush3.bf16.msra.mxu0 %v973_v23 }
 0x5d6   :  { %1615 = vmatprep.subr.bf16.mxu0 %v1799_v1 }
 0x5d8   :  { %1612 = vmatmul.mubr.msk.bf16.vlgmr.msra.gmra.mrb[12].mxu0 %vm541_vm7, %v1950_v25  ;;  %v1734_v25 = vld [vmem:[#allocation2 + $0x1a8] sm:$0xff]  }
 0x5d9   :  { %1616 = vmatpush3.bf16.msra.mxu0 %v1729_v11  ;;  %1631 = vmatprep.mubr.msk.bf16.mxu0 %vm1800_vm0, %v1799_v1 }
 0x5da   :  { %1617 = vmatprep.subr.bf16.mxu0 %v1799_v1 }
 0x5dd   :  { %1618 = vmatpush3.bf16.msra.mxu0 %v1730_v24 }
 0x5de   :  { %1619 = vmatprep.subr.bf16.mxu0 %v1799_v1 }
 0x5e1   :  { %1620 = vmatpush3.bf16.msra.mxu0 %v1731_v26 }
 0x5e2   :  { %1621 = vmatprep.subr.bf16.mxu0 %v1799_v1 }
 0x5e5   :  { %1622 = vmatpush3.bf16.msra.mxu0 %v1732_v27 }
 0x5e6   :  { %1623 = vmatprep.subr.bf16.mxu0 %v1799_v1 }
 0x5e9   :  { %1624 = vmatpush3.bf16.msra.mxu0 %v1733_v28 }
 0x5ea   :  { %1625 = vmatprep.subr.bf16.mxu0 %v1799_v1 }
 0x5ed   :  { %1626 = vmatpush3.bf16.msra.mxu0 %v1734_v25 }
 0x5ee   :  { %1627 = vmatprep.subr.bf16.mxu0 %v1799_v1 }
 0x5f1   :  { %1628 = vmatpush3.bf16.msra.mxu0 %v1735_v29 }
 0x5f2   :  { %1629 = vmatprep.subr.bf16.mxu0 %v1799_v1 }
 0x5f5   :  { %1630 = vmatpush3.bf16.msra.mxu0 %v1736_v30 }
 0x5f6   :  { %1655 = vmatprep.subr.mxu0 %v1799_v1 }
 0x6ab   :  { %v1009_v37 = vpop.f32.mrb[12].mxu0 }
 0x6ac   :  { %v1010_v38 = vadd.f32 %v1009_v37, %v1996_v7  ;;  %v1613_v39 = vpop.f32.mrb[13].mxu0 }
 0x6ad   :  { %v1012_v40 = vpop.f32.mrb[14].mxu0 }
 0x6ae   :  { %v1015_v41 = vpack.c.bf16 %v1010_v38, %v1010_v38  ;;  %v1614_v42 = vpop.f32.mrb[15].mxu0 }
 0x6b0   :  { %1632 = vmatmul.mubr.bf16.vlgmr.msra.gmra.mrb[16].mxu0 %v1015_v41 }
 0x6b1   :  { %1657 = vmatprep.mubr.msk.f32.mxu0 %vm1800_vm0, %v1799_v1  ;;  %v1746_v1 = vpop.eup %1745 }
 0x783   :  { %v1102_v46 = vpop.f32.mrb[16].mxu0 }
 0x784   :  { %v1103_v47 = vadd.f32 %v1369_v45, %v1102_v46  ;;  %v1633_v48 = vpop.f32.mrb[17].mxu0 }
 0x785   :  { %v1105_v49 = vpop.f32.mrb[18].mxu0 }
 0x786   :  { %v1108_v50 = vmax.f32 %v1103_v47, 0.0  ;;  %v1634_v51 = vpop.f32.mrb[19].mxu0 }
 0x788   :  { %v1109_v52 = vpack.c.bf16 %v1108_v50, %v1108_v50 }
 0x78a   :  { %1652 = vmatmul.mubr.bf16.vlgmr.msra.gmra.mrb[16].mxu1 %v1109_v52 }
 0x85d   :  { %v1196_v57 = vpop.f32.mrb[16].mxu1 }
 0x85e   :  { %v1197_v58 = vadd.f32 %v1378_v56, %v1196_v57  ;;  %v1653_v59 = vpop.f32.mrb[17].mxu1 }
 0x85f   :  { %v1199_v60 = vpop.f32.mrb[18].mxu1 }
 0x860   :  { %v1202_v61 = vmax.f32 %v1197_v58, 0.0  ;;  %v1654_v62 = vpop.f32.mrb[19].mxu1 }
 0x862   :  { %1656 = vmatpush3.msra.mxu0 %v1202_v61 }
 0x863   :  { %1658 = vmatmul.mubr.msk.f32.vlgmr.msra.gmra.mrb[20].mxu0 %vm489_vm4, %v1209_v54 }
 0x936   :  { %v1284_v0 = vpop.f32.mrb[20].mxu0 }
 0x937   :  { %v1289_v2 = vmul.f32 %v1746_v1, %v1284_v0  ;;  %v1659_v3 = vpop.f32.mrb[21].mxu0 }
 0x939   :  { %1290 = vst [vmem:[#allocation5] sm:$0x3] %v1289_v2 }
 0x93a   :  { %1780 = shalt.err (!%p1777_p12)
}
 0x93b   :  { %s1781_s24 = scalar_lea.hbm %s2064_s7, 32 }
 0x93c   :  { %p1782_p13 = scmp.ne.s32.totalorder %s2064_s7, %s1781_s24  ;;  %p1785_p0 = scmp.lt.u32.totalorder %s1781_s24, %s2064_s7 }
 0x93e   :  { %p1787_p1 = pnand %p1785_p0, %p1782_p13 }
 0x940   :  { %1790 = shalt.err (!%p1787_p1)
}
 0x941   :  { %1300 = dma.vmem_to_hbm [thread:$0]  %s1298_s1, 32, %s2064_s7, [#allocation4]  }
 0x942   :  { %1793 = dma.done.wait [#allocation4], 32  }
 0x943   :  { %1794 = vsyncadd [#allocation4], 4294967264 }
 0x944   :  { %1304 = vsyncpa [#allocation3], 1 }
 0x945   :  { %1305 = vsyncpa [#allocation4], 1 }

</bundles_post_ra>
